<compile_context>
chip_gen: v6e
topology: v6e:2x2x1
jax: 0.10.0
libtpu: 0.0.40
codegen_flags: <defaults>
</compile_context>

<pallas_src>
import functools

import jax
import jax.numpy as jnp
from jax.experimental import pallas as pl
from jax.experimental.pallas import tpu as pltpu


def _round_up(x, m):
    return (x + m - 1) // m * m


# ---------------------------------------------------------------------------
# Kernel: one (tm, tn) output tile = (tm, K) patch rows @ (K, tn) weight + bias
# ---------------------------------------------------------------------------
def _patch_embed_kernel(x_ref, w_ref, b_ref, o_ref):
    acc = jnp.dot(x_ref[...], w_ref[...], preferred_element_type=jnp.float32)
    o_ref[...] = (acc + b_ref[...]).astype(o_ref.dtype)


# ---------------------------------------------------------------------------
# Tiling / VMEM budgeting
# ---------------------------------------------------------------------------
def _vmem_cap_bytes():
    """Per-generation VMEM budget (leave headroom for Mosaic internal scratch)."""
    try:
        phys = pltpu.get_tpu_info().vmem_capacity_bytes
    except Exception:
        phys = 64 << 20  # conservative fallback: assume v7x-sized VMEM
    # 128-MiB parts (v5e/v6e) -> 64 MiB cap; 64-MiB parts (v7x) -> 32 MiB cap.
    return int(min(phys // 2, 64 << 20))


def _footprint_bytes(tm, tn, K, bpe_in, bpe_w, bpe_out):
    return (2 * tm * K * bpe_in       # patches tile (double-buffered)
            + 2 * K * tn * bpe_w      # weight tile
            + 2 * tn * 4              # f32 bias tile
            + 2 * tm * tn * bpe_out   # output tile (double-buffered)
            + tm * tn * 4             # f32 accumulator working set
            + (2 << 20))              # Mosaic internal scratch slack


def _choose_tiling(M, K, N_pad, bpe_in, bpe_w, bpe_out, cap):
    # M tile: 512 on 128-MiB parts, 256 on v7x; never bigger than the rows we
    # have; guarantee >= 2 M blocks (when M > 8) so both v7x TCs get work.
    tm0 = 512 if cap >= (48 << 20) else 256
    tm0 = min(tm0, _round_up(M, 8))
    if M > 8 and pl.cdiv(M, tm0) < 2:
        tm0 = _round_up(pl.cdiv(M, 2), 8)

    # 1) Prefer a fully VMEM-resident weight (tn == N_pad), shrinking tm if
    #    needed — never shrink the resident-weight tn.
    tm = tm0
    while True:
        if _footprint_bytes(tm, N_pad, K, bpe_in, bpe_w, bpe_out) <= cap:
            return tm, N_pad
        if tm <= 8:
            break
        tm = max(8, _round_up(tm // 2, 8))

    # 2) Weight too large to be resident: tile N (it will be the OUTERMOST
    #    grid axis so each weight tile is still fetched only once).
    for tn in (512, 256, 128):
        if N_pad % tn:
            continue
        tm = tm0
        while True:
            if _footprint_bytes(tm, tn, K, bpe_in, bpe_w, bpe_out) <= cap:
                return tm, tn
            if tm <= 8:
                break
            tm = max(8, _round_up(tm // 2, 8))

    # TODO(synk): tile K as well for extremely large K*tn weight blocks.
    return 8, 128


# ---------------------------------------------------------------------------
# Pallas matmul wrapper
# ---------------------------------------------------------------------------
def patch_embed_matmul(patches, weight_2d, bias_2d, *, out_dtype):
    """patches: (M, K_pad); weight_2d: (K_pad, N_pad); bias_2d: (1, N_pad) f32.

    Returns (M, N_pad); caller slices the N padding off.  No M padding copy:
    the ragged last M block is handled by Pallas' masked edge stores.
    """
    M, K = patches.shape
    assert weight_2d.shape[0] == K
    N_pad = weight_2d.shape[1]
    assert N_pad % 128 == 0, "pad embed_dim to a multiple of 128 lanes"

    cap = _vmem_cap_bytes()
    bpe_in = patches.dtype.itemsize
    bpe_w = weight_2d.dtype.itemsize
    bpe_out = jnp.dtype(out_dtype).itemsize
    tm, tn = _choose_tiling(M, K, N_pad, bpe_in, bpe_w, bpe_out, cap)

    # N outermost: the weight block index is constant over the inner M axis,
    # so it is DMA'd once per N tile (exactly once when tn == N_pad).
    grid = (N_pad // tn, pl.cdiv(M, tm))

    footprint = _footprint_bytes(tm, tn, K, bpe_in, bpe_w, bpe_out)
    vmem_limit = int(min(cap, max(footprint + (2 << 20), 16 << 20)))

    return pl.pallas_call(
        _patch_embed_kernel,
        out_shape=jax.ShapeDtypeStruct((M, N_pad), out_dtype),
        grid_spec=pltpu.PrefetchScalarGridSpec(
            num_scalar_prefetch=0,
            grid=grid,
            in_specs=[
                pl.BlockSpec((tm, K), lambda j, i: (i, 0)),    # patch rows
                pl.BlockSpec((K, tn), lambda j, i: (0, j)),    # weight tile
                pl.BlockSpec((1, tn), lambda j, i: (0, j)),    # f32 bias tile
            ],
            out_specs=pl.BlockSpec((tm, tn), lambda j, i: (i, j)),
        ),
        compiler_params=pltpu.CompilerParams(
            dimension_semantics=("parallel", "parallel"),
            vmem_limit_bytes=vmem_limit,
        ),
    )(patches, weight_2d, bias_2d)


# ---------------------------------------------------------------------------
# Parameter flattening (cacheable) and forward pass
# ---------------------------------------------------------------------------
def prepare_proj_params(weight, bias, *, compute_dtype=jnp.bfloat16):
    """Flatten the Conv3d weight to a lane-dense (K_pad, N_pad) matrix and the
    bias to f32 (1, N_pad).  Pure layout plumbing — compute once and pass the
    result as `proj_params=` to patch_embed_forward in inference loops."""
    embed_dim = weight.shape[0]
    K = weight.shape[1] * weight.shape[2] * weight.shape[3] * weight.shape[4]
    K_pad = _round_up(K, 128)
    N_pad = _round_up(embed_dim, 128)

    w2d = weight.reshape(embed_dim, K).T            # (K, N), (C,ts,pH,pW) order
    if compute_dtype is not None:
        w2d = w2d.astype(compute_dtype)
    b2d = bias.astype(jnp.float32).reshape(1, embed_dim)
    if (K_pad, N_pad) != (K, embed_dim):
        w2d = jnp.pad(w2d, ((0, K_pad - K), (0, N_pad - embed_dim)))
        b2d = jnp.pad(b2d, ((0, 0), (0, N_pad - embed_dim)))
    return w2d, b2d


def patch_embed_forward(x, weight=None, bias=None, *, patch_size, tubelet_size,
                        embed_dim=None, compute_dtype=jnp.bfloat16,
                        out_dtype=None, proj_params=None):
    """Replicates PatchEmbed.forward (flatten=True, norm_layer=None).

    x:      (B, C, T, H, W)                   -- PyTorch NCTHW layout
    weight: (embed_dim, C, tubelet, pH, pW)   -- nn.Conv3d weight layout
    bias:   (embed_dim,)
    Pass `proj_params=prepare_proj_params(weight, bias)` (with static
    `embed_dim=`) to reuse the flattened weight across calls.
    Returns (B, num_patches, embed_dim).
    """
    B, C, T, H, W = x.shape
    pH, pW = patch_size
    ts = tubelet_size
    gT, gH, gW = T // ts, H // pH, W // pW
    num_patches = gT * gH * gW
    K = C * ts * pH * pW
    K_pad = _round_up(K, 128)

    if out_dtype is None:
        out_dtype = x.dtype

    if proj_params is None:
        embed_dim = weight.shape[0]
        proj_params = prepare_proj_params(weight, bias,
                                          compute_dtype=compute_dtype)
    assert embed_dim is not None, "pass embed_dim when using cached proj_params"
    w2d, b2d = proj_params
    assert w2d.shape[0] == K_pad

    # im2col.  Cast first so the transpose copy reads f32 and writes the
    # compute dtype exactly once (XLA fuses convert + transpose).  Flatten
    # order (C, ts, pH, pW) matches the Conv3d weight flatten order.
    # TODO(synk): fuse the im2col into the kernel (BlockSpec over (b, gT)
    # slabs, reorder in VMEM) to remove this HBM round trip on large inputs.
    if compute_dtype is not None:
        x = x.astype(compute_dtype)
    xp = x.reshape(B, C, gT, ts, gH, pH, gW, pW)
    xp = jnp.transpose(xp, (0, 2, 4, 6, 1, 3, 5, 7))   # (B,gT,gH,gW,C,ts,pH,pW)
    patches = xp.reshape(B * num_patches, K)
    if K_pad != K:   # rare (ragged K): zero-pad the contraction axis
        patches = jnp.pad(patches, ((0, 0), (0, K_pad - K)))

    out = patch_embed_matmul(patches, w2d, b2d, out_dtype=out_dtype)
    out = out[:, :embed_dim]
    return out.reshape(B, num_patches, embed_dim)


# ---------------------------------------------------------------------------
# Self-check
# ---------------------------------------------------------------------------
if __name__ == "__main__":
    # Small config consistent with the module: img_size=16, patch_size=8,
    # num_frames=2, tubelet_size=1, in_chans=4, embed_dim=32
    #   -> grid_size=(2,2,2), num_patches=8, K=256.
    B, C, T, H, W = 2, 4, 2, 16, 16
    patch_size = (8, 8)
    tubelet_size = 1
    embed_dim = 32

    key = jax.random.PRNGKey(0)
    kx, kw, kb = jax.random.split(key, 3)
    x = jax.random.normal(kx, (B, C, T, H, W), dtype=jnp.float32)
    weight = jax.random.normal(
        kw, (embed_dim, C, tubelet_size, patch_size[0], patch_size[1]),
        dtype=jnp.float32) * 0.02
    bias = jax.random.normal(kb, (embed_dim,), dtype=jnp.float32) * 0.02

    # Reference: strided conv3d == patch embedding (plain JAX, check only).
    ref = jax.lax.conv_general_dilated(
        x, weight,
        window_strides=(tubelet_size, patch_size[0], patch_size[1]),
        padding="VALID",
        dimension_numbers=("NCTHW", "OITHW", "NCTHW"),
    ) + bias.reshape(1, embed_dim, 1, 1, 1)
    ref = ref.reshape(B, embed_dim, -1).transpose(0, 2, 1)

    # f32 compute path — tight numerical check.
    fwd_f32 = jax.jit(functools.partial(
        patch_embed_forward, patch_size=patch_size, tubelet_size=tubelet_size,
        compute_dtype=None))
    out_f32 = jax.block_until_ready(fwd_f32(x, weight, bias))
    assert out_f32.shape == (B, 8, embed_dim), out_f32.shape
    assert jnp.allclose(out_f32, ref, atol=1e-4, rtol=1e-4)

    # Default bf16 compute path (f32 accumulation + f32 bias), with the
    # flattened weight prepared once and cached across calls.
    proj = prepare_proj_params(weight, bias)          # cache outside the loop
    fwd_bf16 = jax.jit(functools.partial(
        patch_embed_forward, patch_size=patch_size, tubelet_size=tubelet_size,
        embed_dim=embed_dim))
    out_bf16 = jax.block_until_ready(fwd_bf16(x, proj_params=proj))
    assert out_bf16.shape == (B, 8, embed_dim), out_bf16.shape
    assert jnp.allclose(out_bf16, ref, atol=5e-2, rtol=5e-2)

    print("KERNEL_OK")
</pallas_src>

<mosaic_0001>
module attributes {stable_mosaic.version = 11 : i64} {
  func.func @_patch_embed_kernel(%arg0: i32, %arg1: i32, %arg2: memref<8x256xf32, #tpu.memory_space<vmem>>, %arg3: memref<256x128xf32, #tpu.memory_space<vmem>>, %arg4: memref<1x128xf32, #tpu.memory_space<vmem>>, %arg5: memref<8x128xf32, #tpu.memory_space<vmem>>) attributes {dimension_semantics = [#tpu.dimension_semantics<parallel>, #tpu.dimension_semantics<parallel>], iteration_bounds = array<i64: 1, 2>, scalar_prefetch = 0 : i64, scratch_operands = 0 : i64, tpu.core_type = #tpu.core_type<tc>, window_params = [{transform_indices = @transform_0, window_bounds = array<i64: 8, 256>}, {transform_indices = @transform_1, window_bounds = array<i64: 256, 128>}, {transform_indices = @transform_2, window_bounds = array<i64: 1, 128>}, {transform_indices = @transform_3, window_bounds = array<i64: 8, 128>}]} {
    %c0 = arith.constant 0 : index
    %c0_0 = arith.constant 0 : index
    %0 = vector.load %arg2[%c0, %c0_0] : memref<8x256xf32, #tpu.memory_space<vmem>>, vector<8x256xf32>
    %c0_1 = arith.constant 0 : index
    %c0_2 = arith.constant 0 : index
    %1 = vector.load %arg3[%c0_1, %c0_2] : memref<256x128xf32, #tpu.memory_space<vmem>>, vector<256x128xf32>
    %cst = arith.constant dense<0.000000e+00> : vector<8x128xf32>
    %2 = tpu.matmul %0, %1, %cst {dimension_numbers = #tpu.dot_dimension_numbers<[1], [0], [0], [1], [0, 0, 1, 1], [], []>} : vector<8x256xf32>, vector<256x128xf32>, vector<8x128xf32> -> vector<8x128xf32>
    %c0_3 = arith.constant 0 : index
    %c0_4 = arith.constant 0 : index
    %3 = vector.load %arg4[%c0_3, %c0_4] : memref<1x128xf32, #tpu.memory_space<vmem>>, vector<1x128xf32>
    %4 = vector.broadcast %3 : vector<1x128xf32> to vector<8x128xf32>
    %5 = arith.addf %2, %4 : vector<8x128xf32>
    %c0_5 = arith.constant 0 : index
    %c0_6 = arith.constant 0 : index
    %6 = vector.load %arg5[%c0_5, %c0_6] : memref<8x128xf32, #tpu.memory_space<vmem>>, vector<8x128xf32>
    tpu.vector_store %arg5[%c0_5, %c0_6], %5 {strides = array<i32>} : memref<8x128xf32, #tpu.memory_space<vmem>>, vector<8x128xf32>,
    return
  }
  func.func @transform_0(%arg0: i32, %arg1: i32) -> (i32, i32) {
    %c0_i32 = arith.constant 0 : i32
    %c0_i32_0 = arith.constant 0 : i32
    return %arg1, %c0_i32 : i32, i32
  }
  func.func @transform_1(%arg0: i32, %arg1: i32) -> (i32, i32) {
    %c0_i32 = arith.constant 0 : i32
    %c0_i32_0 = arith.constant 0 : i32
    return %c0_i32, %arg0 : i32, i32
  }
  func.func @transform_2(%arg0: i32, %arg1: i32) -> (i32, i32) {
    %c0_i32 = arith.constant 0 : i32
    %c0_i32_0 = arith.constant 0 : i32
    return %c0_i32, %arg0 : i32, i32
  }
  func.func @transform_3(%arg0: i32, %arg1: i32) -> (i32, i32) {
    %c0_i32 = arith.constant 0 : i32
    return %arg1, %arg0 : i32, i32
  }
}

</mosaic_0001>

<bundles_post_ra>
// kernel: patch_embed_forward.1
= control target key start
LH: loop header
LB: loop body
LE: loop exit
PB: predicated region body
PF: predicated region fallthrough
CT: control target
= control target key end

     0   :  { %s548_s12 = smov 0   ;;  %s550_s13 = smov 0   ;;  %s688_s0 = inlined_call_operand.vmem [shape: f32[16,256], index: 0, kind: input, shape index: {}]   ;;  %s689_s1 = inlined_call_operand.vmem [shape: f32[256,128], index: 1, kind: input, shape index: {}]   ;;  %s690_s2 = inlined_call_operand.vmem [shape: f32[1,128], index: 2, kind: input, shape index: {}]   ;;  %s691_s3 = inlined_call_operand.vmem [shape: f32[16,128], index: 3, kind: output, shape index: {}]  }
   0x1   :  { %s552_s14 = smov 0  }
   0x2 LB: > { %s22_s15 = sadd.s32 1, %s522_s13  ;;  %p437_p0 = scmp.ge.s32.totalorder %s526_s14, 1  ;;  %s526_s14 = sphi %s552_s14, %s13_s14   ;;  %s522_s13 = sphi %s550_s13, %s693_s13   ;;  %s518_s12 = sphi %s548_s12, %s692_s12  }
   0x3   : > { %p23_p1 = scmp.ge.s32.totalorder %s22_s15, 2  ;;  %p168_p2 = scmp.lt.s32.totalorder %s526_s14, 3 }
   0x5   : > { %s695_s15 = smov (%p23_p1, %s22_s15), 0  ;;  %p169_p3 = pnand %p437_p0, %p168_p2 }
   0x6   : > { %p201_p4 = scmp.lt.s32.totalorder (!%p169_p3), %s518_s12, 1 }
   0x7   : > { %172 = sbr.rel (%p169_p3) target bundleno = 245 (0xf5), region = 32 }
   0xc   : > { %v253_v0 = vld [vmem:[%s689_s1 + $0xf8] sm:$0xff]  ;;  %v252_v2 = vld [vmem:[%s689_s1 + $0xf0] sm:$0xff]  ;;  %v251_v4 = vld [vmem:[%s689_s1 + $0xe8] sm:$0xff]  ;;  %s697_s12 = smov (!%p201_p4, %s518_s12), 1 }
   0xd   : > { %v237_v1 = vld [vmem:[%s689_s1 + $0x78] sm:$0xff]  ;;  %445 = vmatprep.subr.mxu0 %v253_v0  ;;  %v236_v3 = vld [vmem:[%s689_s1 + $0x70] sm:$0xff]  ;;  %v235_v5 = vld [vmem:[%s689_s1 + $0x68] sm:$0xff]  ;;  %s444_s30 = sshll.u32 %s697_s12, 4  ;;  %s440_s17 = sshll.u32 %s697_s12, 3 }
   0xe   : > { %446 = vmatpush3.msra.mxu0 %v237_v1  ;;  %v250_v6 = vld [vmem:[%s689_s1 + $0xe0] sm:$0xff]  ;;  %v249_v8 = vld [vmem:[%s689_s1 + $0xd8] sm:$0xff]  ;;  %s602_s16 = scalar_lea.vmem %s688_s0, %s444_s30  ;;  %v248_v10 = vld [vmem:[%s689_s1 + $0xd0] sm:$0xff]  ;;  %s219_s22 = scalar_lea.vmem %s691_s3, %s440_s17 }
   0xf   : > { %447 = vmatprep.subr.mxu0 %v252_v2  ;;  %v234_v7 = vld [vmem:[%s689_s1 + $0x60] sm:$0xff]  ;;  %v233_v9 = vld [vmem:[%s689_s1 + $0x58] sm:$0xff]  ;;  %v232_v11 = vld [vmem:[%s689_s1 + $0x50] sm:$0xff] }
  0x10   : > { %448 = vmatpush3.msra.mxu0 %v236_v3  ;;  %v247_v12 = vld [vmem:[%s689_s1 + $0xc8] sm:$0xff]  ;;  %v246_v15 = vld [vmem:[%s689_s1 + $0xc0] sm:$0xff]  ;;  %v245_v17 = vld [vmem:[%s689_s1 + $0xb8] sm:$0xff] }
  0x11   : > { %449 = vmatprep.subr.mxu0 %v251_v4  ;;  %v221_v13 = vld [vmem:[%s602_s16 + $0x8] sm:$0xff]  ;;  %v230_v16 = vld [vmem:[%s689_s1 + $0x40] sm:$0xff]  ;;  %v229_v18 = vld [vmem:[%s689_s1 + $0x38] sm:$0xff] }
  0x12   : > { %450 = vmatpush3.msra.mxu0 %v235_v5  ;;  %v231_v14 = vld [vmem:[%s689_s1 + $0x48] sm:$0xff]  ;;  %325 = vmatprep.mubr.f32.mxu0 %v221_v13  ;;  %v244_v19 = vld [vmem:[%s689_s1 + $0xb0] sm:$0xff]  ;;  %v242_v23 = vld [vmem:[%s689_s1 + $0xa0] sm:$0xff] }
  0x13   : > { %451 = vmatprep.subr.mxu0 %v250_v6  ;;  %v228_v20 = vld [vmem:[%s689_s1 + $0x30] sm:$0xff]  ;;  %v243_v21 = vld [vmem:[%s689_s1 + $0xa8] sm:$0xff]  ;;  %v226_v24 = vld [vmem:[%s689_s1 + $0x20] sm:$0xff] }
  0x14   : > { %452 = vmatpush3.msra.mxu0 %v234_v7  ;;  %v227_v22 = vld [vmem:[%s689_s1 + $0x28] sm:$0xff]  ;;  %v241_v25 = vld [vmem:[%s689_s1 + $0x98] sm:$0xff]  ;;  %v240_v27 = vld [vmem:[%s689_s1 + $0x90] sm:$0xff] }
  0x15   : > { %453 = vmatprep.subr.mxu0 %v249_v8  ;;  %v225_v26 = vld [vmem:[%s689_s1 + $0x18] sm:$0xff]  ;;  %v224_v28 = vld [vmem:[%s689_s1 + $0x10] sm:$0xff]  ;;  %v239_v29 = vld [vmem:[%s689_s1 + $0x88] sm:$0xff] }
  0x16   : > { %454 = vmatpush3.msra.mxu0 %v233_v9  ;;  %v223_v30 = vld [vmem:[%s689_s1 + $0x8] sm:$0xff]  ;;  %v238_v31 = vld [vmem:[%s689_s1 + $0x80] sm:$0xff] }
  0x17   : > { %455 = vmatprep.subr.mxu0 %v248_v10  ;;  %v222_v32 = vld [vmem:[%s689_s1] sm:$0xff] }
  0x18   : > { %456 = vmatpush3.msra.mxu0 %v232_v11  ;;  %v220_v33 = vld [vmem:[%s602_s16] sm:$0xff] }
  0x19   : > { %457 = vmatprep.subr.mxu0 %v247_v12  ;;  %v441_v35 = vld [vmem:[%s690_s2] ss:$0 sm:$0xff] }
  0x1a   : > { %458 = vmatpush3.msra.mxu0 %v231_v14 }
  0x1b   : > { %459 = vmatprep.subr.mxu0 %v246_v15 }
  0x1c   : > { %460 = vmatpush3.msra.mxu0 %v230_v16 }
  0x1d   : > { %461 = vmatprep.subr.mxu0 %v245_v17 }
  0x1e   : > { %462 = vmatpush3.msra.mxu0 %v229_v18 }
  0x1f   : > { %463 = vmatprep.subr.mxu0 %v244_v19 }
  0x20   : > { %464 = vmatpush3.msra.mxu0 %v228_v20 }
  0x21   : > { %465 = vmatprep.subr.mxu0 %v243_v21 }
  0x22   : > { %466 = vmatpush3.msra.mxu0 %v227_v22 }
  0x23   : > { %467 = vmatprep.subr.mxu0 %v242_v23 }
  0x24   : > { %468 = vmatpush3.msra.mxu0 %v226_v24 }
  0x25   : > { %469 = vmatprep.subr.mxu0 %v241_v25 }
  0x26   : > { %470 = vmatpush3.msra.mxu0 %v225_v26 }
  0x27   : > { %471 = vmatprep.subr.mxu0 %v240_v27 }
  0x28   : > { %472 = vmatpush3.msra.mxu0 %v224_v28 }
  0x29   : > { %473 = vmatprep.subr.mxu0 %v239_v29 }
  0x2a   : > { %474 = vmatpush3.msra.mxu0 %v223_v30 }
  0x2b   : > { %475 = vmatprep.subr.mxu0 %v238_v31 }
  0x2c   : > { %476 = vmatpush3.msra.mxu0 %v222_v32 }
  0x2d   : > { %326 = vmatmul.mubr.f32.vlgmr.msra.gmra.mxu0 %v220_v33 }
  0xed   : > { %v477_v34 = vpop.f32.mrf.mxu0 }
  0xef   : > { %v478_v36 = vpop.f32.mrf.mxu0 }
  0xf0   : > { %v479_v37 = vadd.f32 %v478_v36, %v477_v34 }
  0xf2   : > { %v328_v38 = vadd.f32 %v479_v37, %v441_v35 }
  0xf4   : > { %331 = vst [vmem:[%s219_s22] sm:$0xff] %v328_v38 }
  0xf5 PF: > { %s13_s14 = sadd.s32 1, %s526_s14   ;;  %s692_s12 = smov %s522_s13 }
  0xf6   : > { %p10_p5 = scmp.ge.s32.totalorder %s13_s14, 4   ;;  %s693_s13 = smov %s695_s15 }
  0xf8   :  { %12 = sbr.rel (!%p10_p5) target bundleno = 2 (0x2), region = 68 }

</bundles_post_ra>
